<compile_context>
chip_gen: v5e
topology: v5e:2x2
jax: 0.10.0
libtpu: 0.0.40
codegen_flags: <defaults>
</compile_context>

<pallas_src>
import functools

import jax
import jax.numpy as jnp
from jax.experimental import pallas as pl
from jax.experimental.pallas import tpu as pltpu

LN_EPS = 1e-5  # nn.LayerNorm default


def _layernorm_relu(h, g, b):
    """f32 LayerNorm (E[x^2]-E[x]^2 variance -> two independent XLU reductions)
    + affine + ReLU."""
    inv_n = 1.0 / h.shape[-1]
    s1 = jnp.sum(h, axis=-1, keepdims=True)
    s2 = jnp.sum(h * h, axis=-1, keepdims=True)
    mu = s1 * inv_n
    var = jnp.maximum(s2 * inv_n - mu * mu, 0.0)
    h = (h - mu) * jax.lax.rsqrt(var + LN_EPS)
    h = h * g + b
    return jnp.maximum(h, 0.0)


def ppo_kernel(action_size,
               state_ref,
               w1_ref, b1_ref, g1_ref, be1_ref,
               w2_ref, b2_ref, g2_ref, be2_ref,
               w3_ref, b3_ref,
               wh_ref, bh_ref,          # fused, 128-lane-padded actor|critic head
               out_ref):                # (TB, OUT_W): probs in [0:A], value in [A]
    x = state_ref[...].astype(jnp.bfloat16)

    # ---- fc1 + LayerNorm + ReLU ----
    h = jnp.dot(x, w1_ref[...], preferred_element_type=jnp.float32) + b1_ref[...]
    h = _layernorm_relu(h, g1_ref[...], be1_ref[...])

    # ---- fc2 + LayerNorm + ReLU ----
    h = jnp.dot(h.astype(jnp.bfloat16), w2_ref[...],
                preferred_element_type=jnp.float32) + b2_ref[...]
    h = _layernorm_relu(h, g2_ref[...], be2_ref[...])

    # ---- fc3 + ReLU ----
    h = jnp.dot(h.astype(jnp.bfloat16), w3_ref[...],
                preferred_element_type=jnp.float32) + b3_ref[...]
    h = jnp.maximum(h, 0.0)

    # ---- fused actor|critic head: one lane-dense matmul ----
    head = jnp.dot(h.astype(jnp.bfloat16), wh_ref[...],
                   preferred_element_type=jnp.float32) + bh_ref[...]

    # Lane mask: lanes [0:A] are logits, lane A is the value, rest are padding.
    lane = jax.lax.broadcasted_iota(jnp.int32, head.shape, dimension=1)
    is_logit = lane < action_size

    # Numerically-stable softmax over the logit lanes only (masked lanes -> 0).
    logits = jnp.where(is_logit, head, -1e30)
    m = jnp.max(logits, axis=-1, keepdims=True)
    e = jnp.exp(logits - m)
    denom = jnp.sum(e, axis=-1, keepdims=True)
    probs = e * pl.reciprocal(denom, approx=True)   # EUP slot, off the VPU path

    # Single unmasked, lane-dense store: probs | value | zeros.
    out_ref[...] = jnp.where(is_logit, probs,
                             jnp.where(lane == action_size, head, 0.0))


def _choose_tb(batch, block_batch):
    """Batch tile: sublane-aligned, large enough to amortize per-step overhead,
    capped at cdiv(B, 2) so the grid has >= 2 blocks whenever the batch allows
    it (feeds both v7x TensorCores via the "parallel" batch axis)."""
    tb = min(block_batch, pl.cdiv(batch, 2))
    tb = max(8, ((tb + 7) // 8) * 8)
    return tb


def ppo_forward(state, params, *, block_batch=1024, vmem_limit_bytes=None):
    """state: [B, state_size] float32.  Returns (action_probs [B, A], value [B, 1])."""
    B, S = state.shape
    A = params["action_size"]
    OUT_W = params["wh"].shape[1]            # lane-dense padded head width (>=128)

    TB = _choose_tb(B, block_batch)
    n_blocks = pl.cdiv(B, TB)                # ragged last block handled by Pallas

    args = (state,
            params["w1"], params["b1"], params["g1"], params["be1"],
            params["w2"], params["b2"], params["g2"], params["be2"],
            params["w3"], params["b3"],
            params["wh"], params["bh"])

    # Weights/biases/LN params: one block, same index every grid step -> VMEM
    # resident across the whole grid.
    resident = lambda a: pl.BlockSpec(a.shape, lambda i: (0, 0))
    in_specs = ([pl.BlockSpec((TB, S), lambda i: (i, 0))]
                + [resident(a) for a in args[1:]])

    out = pl.pallas_call(
        functools.partial(ppo_kernel, A),
        out_shape=jax.ShapeDtypeStruct((B, OUT_W), jnp.float32),
        grid=(n_blocks,),
        in_specs=in_specs,
        out_specs=pl.BlockSpec((TB, OUT_W), lambda i: (i, 0)),
        compiler_params=pltpu.CompilerParams(
            dimension_semantics=("parallel",),
            vmem_limit_bytes=vmem_limit_bytes),
    )(*args)

    probs = out[:, :A]
    value = out[:, A:A + 1]
    return probs, value


def init_params(key, state_size, action_size, hidden_size):
    """Deterministic synthetic init mirroring nn.Linear's U(-1/sqrt(fan_in), .).
    Matmul weights stored bf16, pre-transposed to [in_features, out_features]."""
    h2 = hidden_size // 2
    ks = jax.random.split(key, 10)

    def lin(kw, kb, fan_in, fan_out):
        bound = 1.0 / jnp.sqrt(fan_in)
        w = jax.random.uniform(kw, (fan_in, fan_out), jnp.float32, -bound, bound)
        b = jax.random.uniform(kb, (1, fan_out), jnp.float32, -bound, bound)
        return w, b

    w1, b1 = lin(ks[0], ks[1], state_size, hidden_size)
    w2, b2 = lin(ks[2], ks[3], hidden_size, hidden_size)
    w3, b3 = lin(ks[4], ks[5], hidden_size, h2)
    wa, ba = lin(ks[6], ks[7], h2, action_size)
    wc, bc = lin(ks[8], ks[9], h2, 1)

    # Fused, lane-dense actor|critic head padded to a multiple of 128 output
    # columns: cols [0:A] actor, col A critic, rest zero (masked in-kernel).
    out_w = max(128, ((action_size + 1 + 127) // 128) * 128)
    wh = jnp.zeros((h2, out_w), jnp.float32)
    wh = wh.at[:, :action_size].set(wa).at[:, action_size:action_size + 1].set(wc)
    bh = jnp.zeros((1, out_w), jnp.float32)
    bh = bh.at[:, :action_size].set(ba).at[:, action_size:action_size + 1].set(bc)

    bf16 = jnp.bfloat16
    return dict(
        action_size=action_size,
        w1=w1.astype(bf16), b1=b1,
        g1=jnp.ones((1, hidden_size), jnp.float32),
        be1=jnp.zeros((1, hidden_size), jnp.float32),
        w2=w2.astype(bf16), b2=b2,
        g2=jnp.ones((1, hidden_size), jnp.float32),
        be2=jnp.zeros((1, hidden_size), jnp.float32),
        w3=w3.astype(bf16), b3=b3,
        wh=wh.astype(bf16), bh=bh,
    )


def ppo_forward_ref(state, p):
    """Pure-JAX reference mirroring the kernel's bf16 matmul operands."""
    def mm(x, w):
        return jnp.dot(x.astype(jnp.bfloat16), w,
                       preferred_element_type=jnp.float32)

    def ln(x, g, b):
        mu = jnp.mean(x, axis=-1, keepdims=True)
        var = jnp.maximum(jnp.mean(x * x, axis=-1, keepdims=True) - mu * mu, 0.0)
        return (x - mu) * jax.lax.rsqrt(var + LN_EPS) * g + b

    A = p["action_size"]
    h = jnp.maximum(ln(mm(state, p["w1"]) + p["b1"], p["g1"], p["be1"]), 0.0)
    h = jnp.maximum(ln(mm(h, p["w2"]) + p["b2"], p["g2"], p["be2"]), 0.0)
    h = jnp.maximum(mm(h, p["w3"]) + p["b3"], 0.0)
    head = mm(h, p["wh"]) + p["bh"]
    probs = jax.nn.softmax(head[:, :A], axis=-1)
    value = head[:, A:A + 1]
    return probs, value


if __name__ == "__main__":
    batch = 8
    state_size = 32
    action_size = 8
    hidden_size = 32   # small for test; module default is 256

    key = jax.random.PRNGKey(0)
    k_state, k_params = jax.random.split(key)
    state = jax.random.normal(k_state, (batch, state_size), jnp.float32)
    params = init_params(k_params, state_size, action_size, hidden_size)

    probs, value = jax.block_until_ready(ppo_forward(state, params))
    probs_ref, value_ref = ppo_forward_ref(state, params)

    assert probs.shape == (batch, action_size) and value.shape == (batch, 1)
    # bf16 matmuls + approx reciprocal -> slightly looser tolerances.
    assert jnp.allclose(probs, probs_ref, atol=5e-3, rtol=5e-3)
    assert jnp.allclose(value, value_ref, atol=5e-3, rtol=5e-3)
    assert jnp.allclose(jnp.sum(probs, axis=-1), 1.0, atol=5e-3)

    print("KERNEL_OK")
</pallas_src>

<mosaic_0001>
module attributes {stable_mosaic.version = 11 : i64} {
  func.func @ppo_kernel(%arg0: i32, %arg1: memref<8x32xf32, #tpu.memory_space<vmem>>, %arg2: memref<32x32xbf16, #tpu.memory_space<vmem>>, %arg3: memref<1x32xf32, #tpu.memory_space<vmem>>, %arg4: memref<1x32xf32, #tpu.memory_space<vmem>>, %arg5: memref<1x32xf32, #tpu.memory_space<vmem>>, %arg6: memref<32x32xbf16, #tpu.memory_space<vmem>>, %arg7: memref<1x32xf32, #tpu.memory_space<vmem>>, %arg8: memref<1x32xf32, #tpu.memory_space<vmem>>, %arg9: memref<1x32xf32, #tpu.memory_space<vmem>>, %arg10: memref<32x16xbf16, #tpu.memory_space<vmem>>, %arg11: memref<1x16xf32, #tpu.memory_space<vmem>>, %arg12: memref<16x128xbf16, #tpu.memory_space<vmem>>, %arg13: memref<1x128xf32, #tpu.memory_space<vmem>>, %arg14: memref<8x128xf32, #tpu.memory_space<vmem>>) attributes {dimension_semantics = [#tpu.dimension_semantics<parallel>], iteration_bounds = array<i64: 1>, scalar_prefetch = 0 : i64, scratch_operands = 0 : i64, tpu.core_type = #tpu.core_type<tc>, window_params = [{transform_indices = @transform_0, window_bounds = array<i64: 8, 32>}, {pipeline_mode = #tpu.pipeline_mode<synchronous>, transform_indices = @transform_1, window_bounds = array<i64: 32, 32>}, {pipeline_mode = #tpu.pipeline_mode<synchronous>, transform_indices = @transform_2, window_bounds = array<i64: 1, 32>}, {pipeline_mode = #tpu.pipeline_mode<synchronous>, transform_indices = @transform_3, window_bounds = array<i64: 1, 32>}, {pipeline_mode = #tpu.pipeline_mode<synchronous>, transform_indices = @transform_4, window_bounds = array<i64: 1, 32>}, {pipeline_mode = #tpu.pipeline_mode<synchronous>, transform_indices = @transform_5, window_bounds = array<i64: 32, 32>}, {pipeline_mode = #tpu.pipeline_mode<synchronous>, transform_indices = @transform_6, window_bounds = array<i64: 1, 32>}, {pipeline_mode = #tpu.pipeline_mode<synchronous>, transform_indices = @transform_7, window_bounds = array<i64: 1, 32>}, {pipeline_mode = #tpu.pipeline_mode<synchronous>, transform_indices = @transform_8, window_bounds = array<i64: 1, 32>}, {pipeline_mode = #tpu.pipeline_mode<synchronous>, transform_indices = @transform_9, window_bounds = array<i64: 32, 16>}, {pipeline_mode = #tpu.pipeline_mode<synchronous>, transform_indices = @transform_10, window_bounds = array<i64: 1, 16>}, {pipeline_mode = #tpu.pipeline_mode<synchronous>, transform_indices = @transform_11, window_bounds = array<i64: 16, 128>}, {pipeline_mode = #tpu.pipeline_mode<synchronous>, transform_indices = @transform_12, window_bounds = array<i64: 1, 128>}, {transform_indices = @transform_13, window_bounds = array<i64: 8, 128>}]} {
    %c0 = arith.constant 0 : index
    %c0_0 = arith.constant 0 : index
    %0 = vector.load %arg1[%c0, %c0_0] : memref<8x32xf32, #tpu.memory_space<vmem>>, vector<8x32xf32>
    %1 = arith.truncf %0 : vector<8x32xf32> to vector<8x32xbf16>
    %c0_1 = arith.constant 0 : index
    %c0_2 = arith.constant 0 : index
    %2 = vector.load %arg2[%c0_1, %c0_2] : memref<32x32xbf16, #tpu.memory_space<vmem>>, vector<32x32xbf16>
    %cst = arith.constant dense<0.000000e+00> : vector<8x32xf32>
    %3 = tpu.matmul %1, %2, %cst {dimension_numbers = #tpu.dot_dimension_numbers<[1], [0], [0], [1], [0, 0, 1, 1], [], []>} : vector<8x32xbf16>, vector<32x32xbf16>, vector<8x32xf32> -> vector<8x32xf32>
    %c0_3 = arith.constant 0 : index
    %c0_4 = arith.constant 0 : index
    %4 = vector.load %arg3[%c0_3, %c0_4] : memref<1x32xf32, #tpu.memory_space<vmem>>, vector<1x32xf32>
    %5 = vector.broadcast %4 : vector<1x32xf32> to vector<8x32xf32>
    %6 = arith.addf %3, %5 : vector<8x32xf32>
    %c0_5 = arith.constant 0 : index
    %c0_6 = arith.constant 0 : index
    %7 = vector.load %arg4[%c0_5, %c0_6] : memref<1x32xf32, #tpu.memory_space<vmem>>, vector<1x32xf32>
    %c0_7 = arith.constant 0 : index
    %c0_8 = arith.constant 0 : index
    %8 = vector.load %arg5[%c0_7, %c0_8] : memref<1x32xf32, #tpu.memory_space<vmem>>, vector<1x32xf32>
    %cst_9 = arith.constant dense<0.000000e+00> : vector<8xf32>
    %9 = vector.multi_reduction <add>, %6, %cst_9 [1] : vector<8x32xf32> to vector<8xf32>
    %10 = vector.shape_cast %9 : vector<8xf32> to vector<8x1xf32>
    %11 = arith.mulf %6, %6 : vector<8x32xf32>
    %cst_10 = arith.constant dense<0.000000e+00> : vector<8xf32>
    %12 = vector.multi_reduction <add>, %11, %cst_10 [1] : vector<8x32xf32> to vector<8xf32>
    %13 = vector.shape_cast %12 : vector<8xf32> to vector<8x1xf32>
    %cst_11 = arith.constant 3.125000e-02 : f32
    %14 = vector.broadcast %cst_11 : f32 to vector<8x1xf32>
    %15 = arith.mulf %10, %14 : vector<8x1xf32>
    %cst_12 = arith.constant 3.125000e-02 : f32
    %16 = vector.broadcast %cst_12 : f32 to vector<8x1xf32>
    %17 = arith.mulf %13, %16 : vector<8x1xf32>
    %18 = arith.mulf %15, %15 : vector<8x1xf32>
    %19 = arith.subf %17, %18 : vector<8x1xf32>
    %cst_13 = arith.constant 0.000000e+00 : f32
    %20 = vector.broadcast %cst_13 : f32 to vector<8x1xf32>
    %21 = arith.maximumf %19, %20 : vector<8x1xf32>
    %22 = vector.broadcast %15 : vector<8x1xf32> to vector<8x32xf32>
    %23 = arith.subf %6, %22 : vector<8x32xf32>
    %cst_14 = arith.constant 9.99999974E-6 : f32
    %24 = vector.broadcast %cst_14 : f32 to vector<8x1xf32>
    %25 = arith.addf %21, %24 : vector<8x1xf32>
    %26 = math.rsqrt %25 : vector<8x1xf32>
    %27 = vector.broadcast %26 : vector<8x1xf32> to vector<8x32xf32>
    %28 = arith.mulf %23, %27 : vector<8x32xf32>
    %29 = vector.broadcast %7 : vector<1x32xf32> to vector<8x32xf32>
    %30 = arith.mulf %28, %29 : vector<8x32xf32>
    %31 = vector.broadcast %8 : vector<1x32xf32> to vector<8x32xf32>
    %32 = arith.addf %30, %31 : vector<8x32xf32>
    %cst_15 = arith.constant 0.000000e+00 : f32
    %33 = vector.broadcast %cst_15 : f32 to vector<8x32xf32>
    %34 = arith.maximumf %32, %33 : vector<8x32xf32>
    %35 = arith.truncf %34 : vector<8x32xf32> to vector<8x32xbf16>
    %c0_16 = arith.constant 0 : index
    %c0_17 = arith.constant 0 : index
    %36 = vector.load %arg6[%c0_16, %c0_17] : memref<32x32xbf16, #tpu.memory_space<vmem>>, vector<32x32xbf16>
    %cst_18 = arith.constant dense<0.000000e+00> : vector<8x32xf32>
    %37 = tpu.matmul %35, %36, %cst_18 {dimension_numbers = #tpu.dot_dimension_numbers<[1], [0], [0], [1], [0, 0, 1, 1], [], []>} : vector<8x32xbf16>, vector<32x32xbf16>, vector<8x32xf32> -> vector<8x32xf32>
    %c0_19 = arith.constant 0 : index
    %c0_20 = arith.constant 0 : index
    %38 = vector.load %arg7[%c0_19, %c0_20] : memref<1x32xf32, #tpu.memory_space<vmem>>, vector<1x32xf32>
    %39 = vector.broadcast %38 : vector<1x32xf32> to vector<8x32xf32>
    %40 = arith.addf %37, %39 : vector<8x32xf32>
    %c0_21 = arith.constant 0 : index
    %c0_22 = arith.constant 0 : index
    %41 = vector.load %arg8[%c0_21, %c0_22] : memref<1x32xf32, #tpu.memory_space<vmem>>, vector<1x32xf32>
    %c0_23 = arith.constant 0 : index
    %c0_24 = arith.constant 0 : index
    %42 = vector.load %arg9[%c0_23, %c0_24] : memref<1x32xf32, #tpu.memory_space<vmem>>, vector<1x32xf32>
    %cst_25 = arith.constant dense<0.000000e+00> : vector<8xf32>
    %43 = vector.multi_reduction <add>, %40, %cst_25 [1] : vector<8x32xf32> to vector<8xf32>
    %44 = vector.shape_cast %43 : vector<8xf32> to vector<8x1xf32>
    %45 = arith.mulf %40, %40 : vector<8x32xf32>
    %cst_26 = arith.constant dense<0.000000e+00> : vector<8xf32>
    %46 = vector.multi_reduction <add>, %45, %cst_26 [1] : vector<8x32xf32> to vector<8xf32>
    %47 = vector.shape_cast %46 : vector<8xf32> to vector<8x1xf32>
    %cst_27 = arith.constant 3.125000e-02 : f32
    %48 = vector.broadcast %cst_27 : f32 to vector<8x1xf32>
    %49 = arith.mulf %44, %48 : vector<8x1xf32>
    %cst_28 = arith.constant 3.125000e-02 : f32
    %50 = vector.broadcast %cst_28 : f32 to vector<8x1xf32>
    %51 = arith.mulf %47, %50 : vector<8x1xf32>
    %52 = arith.mulf %49, %49 : vector<8x1xf32>
    %53 = arith.subf %51, %52 : vector<8x1xf32>
    %cst_29 = arith.constant 0.000000e+00 : f32
    %54 = vector.broadcast %cst_29 : f32 to vector<8x1xf32>
    %55 = arith.maximumf %53, %54 : vector<8x1xf32>
    %56 = vector.broadcast %49 : vector<8x1xf32> to vector<8x32xf32>
    %57 = arith.subf %40, %56 : vector<8x32xf32>
    %cst_30 = arith.constant 9.99999974E-6 : f32
    %58 = vector.broadcast %cst_30 : f32 to vector<8x1xf32>
    %59 = arith.addf %55, %58 : vector<8x1xf32>
    %60 = math.rsqrt %59 : vector<8x1xf32>
    %61 = vector.broadcast %60 : vector<8x1xf32> to vector<8x32xf32>
    %62 = arith.mulf %57, %61 : vector<8x32xf32>
    %63 = vector.broadcast %41 : vector<1x32xf32> to vector<8x32xf32>
    %64 = arith.mulf %62, %63 : vector<8x32xf32>
    %65 = vector.broadcast %42 : vector<1x32xf32> to vector<8x32xf32>
    %66 = arith.addf %64, %65 : vector<8x32xf32>
    %cst_31 = arith.constant 0.000000e+00 : f32
    %67 = vector.broadcast %cst_31 : f32 to vector<8x32xf32>
    %68 = arith.maximumf %66, %67 : vector<8x32xf32>
    %69 = arith.truncf %68 : vector<8x32xf32> to vector<8x32xbf16>
    %c0_32 = arith.constant 0 : index
    %c0_33 = arith.constant 0 : index
    %70 = vector.load %arg10[%c0_32, %c0_33] : memref<32x16xbf16, #tpu.memory_space<vmem>>, vector<32x16xbf16>
    %cst_34 = arith.constant dense<0.000000e+00> : vector<8x16xf32>
    %71 = tpu.matmul %69, %70, %cst_34 {dimension_numbers = #tpu.dot_dimension_numbers<[1], [0], [0], [1], [0, 0, 1, 1], [], []>} : vector<8x32xbf16>, vector<32x16xbf16>, vector<8x16xf32> -> vector<8x16xf32>
    %c0_35 = arith.constant 0 : index
    %c0_36 = arith.constant 0 : index
    %72 = vector.load %arg11[%c0_35, %c0_36] : memref<1x16xf32, #tpu.memory_space<vmem>>, vector<1x16xf32>
    %73 = vector.broadcast %72 : vector<1x16xf32> to vector<8x16xf32>
    %74 = arith.addf %71, %73 : vector<8x16xf32>
    %cst_37 = arith.constant 0.000000e+00 : f32
    %75 = vector.broadcast %cst_37 : f32 to vector<8x16xf32>
    %76 = arith.maximumf %74, %75 : vector<8x16xf32>
    %77 = arith.truncf %76 : vector<8x16xf32> to vector<8x16xbf16>
    %c0_38 = arith.constant 0 : index
    %c0_39 = arith.constant 0 : index
    %78 = vector.load %arg12[%c0_38, %c0_39] : memref<16x128xbf16, #tpu.memory_space<vmem>>, vector<16x128xbf16>
    %cst_40 = arith.constant dense<0.000000e+00> : vector<8x128xf32>
    %79 = tpu.matmul %77, %78, %cst_40 {dimension_numbers = #tpu.dot_dimension_numbers<[1], [0], [0], [1], [0, 0, 1, 1], [], []>} : vector<8x16xbf16>, vector<16x128xbf16>, vector<8x128xf32> -> vector<8x128xf32>
    %c0_41 = arith.constant 0 : index
    %c0_42 = arith.constant 0 : index
    %80 = vector.load %arg13[%c0_41, %c0_42] : memref<1x128xf32, #tpu.memory_space<vmem>>, vector<1x128xf32>
    %81 = vector.broadcast %80 : vector<1x128xf32> to vector<8x128xf32>
    %82 = arith.addf %79, %81 : vector<8x128xf32>
    %83 = tpu.iota {dimensions = array<i32: 1>} : vector<8x128xi32>
    %c8_i32 = arith.constant 8 : i32
    %84 = vector.broadcast %c8_i32 : i32 to vector<8x128xi32>
    %85 = arith.cmpi slt, %83, %84 : vector<8x128xi32>
    %cst_43 = arith.constant -1.000000e+30 : f32
    %86 = vector.broadcast %cst_43 : f32 to vector<8x128xf32>
    %87 = arith.select %85, %82, %86 : vector<8x128xi1>, vector<8x128xf32>
    %cst_44 = arith.constant dense<0xFF800000> : vector<8xf32>
    %88 = vector.multi_reduction <maximumf>, %87, %cst_44 [1] : vector<8x128xf32> to vector<8xf32>
    %89 = vector.shape_cast %88 : vector<8xf32> to vector<8x1xf32>
    %90 = vector.broadcast %89 : vector<8x1xf32> to vector<8x128xf32>
    %91 = arith.subf %87, %90 : vector<8x128xf32>
    %92 = math.exp %91 : vector<8x128xf32>
    %cst_45 = arith.constant dense<0.000000e+00> : vector<8xf32>
    %93 = vector.multi_reduction <add>, %92, %cst_45 [1] : vector<8x128xf32> to vector<8xf32>
    %94 = vector.shape_cast %93 : vector<8xf32> to vector<8x1xf32>
    %95 = tpu.reciprocal %94 {approx = true} : vector<8x1xf32> -> vector<8x1xf32>
    %96 = vector.broadcast %95 : vector<8x1xf32> to vector<8x128xf32>
    %97 = arith.mulf %92, %96 : vector<8x128xf32>
    %c8_i32_46 = arith.constant 8 : i32
    %98 = vector.broadcast %c8_i32_46 : i32 to vector<8x128xi32>
    %99 = arith.cmpi eq, %83, %98 : vector<8x128xi32>
    %cst_47 = arith.constant 0.000000e+00 : f32
    %100 = vector.broadcast %cst_47 : f32 to vector<8x128xf32>
    %101 = arith.select %99, %82, %100 : vector<8x128xi1>, vector<8x128xf32>
    %102 = arith.select %85, %97, %101 : vector<8x128xi1>, vector<8x128xf32>
    %c0_48 = arith.constant 0 : index
    %c0_49 = arith.constant 0 : index
    %103 = vector.load %arg14[%c0_48, %c0_49] : memref<8x128xf32, #tpu.memory_space<vmem>>, vector<8x128xf32>
    tpu.vector_store %arg14[%c0_48, %c0_49], %102 {strides = array<i32>} : memref<8x128xf32, #tpu.memory_space<vmem>>, vector<8x128xf32>,
    return
  }
  func.func @transform_0(%arg0: i32) -> (i32, i32) {
    %c0_i32 = arith.constant 0 : i32
    %c0_i32_0 = arith.constant 0 : i32
    return %arg0, %c0_i32 : i32, i32
  }
  func.func @transform_1(%arg0: i32) -> (i32, i32) {
    %c0_i32 = arith.constant 0 : i32
    %c0_i32_0 = arith.constant 0 : i32
    %c0_i32_1 = arith.constant 0 : i32
    return %c0_i32, %c0_i32_0 : i32, i32
  }
  func.func @transform_2(%arg0: i32) -> (i32, i32) {
    %c0_i32 = arith.constant 0 : i32
    %c0_i32_0 = arith.constant 0 : i32
    %c0_i32_1 = arith.constant 0 : i32
    return %c0_i32, %c0_i32_0 : i32, i32
  }
  func.func @transform_3(%arg0: i32) -> (i32, i32) {
    %c0_i32 = arith.constant 0 : i32
    %c0_i32_0 = arith.constant 0 : i32
    %c0_i32_1 = arith.constant 0 : i32
    return %c0_i32, %c0_i32_0 : i32, i32
  }
  func.func @transform_4(%arg0: i32) -> (i32, i32) {
    %c0_i32 = arith.constant 0 : i32
    %c0_i32_0 = arith.constant 0 : i32
    %c0_i32_1 = arith.constant 0 : i32
    return %c0_i32, %c0_i32_0 : i32, i32
  }
  func.func @transform_5(%arg0: i32) -> (i32, i32) {
    %c0_i32 = arith.constant 0 : i32
    %c0_i32_0 = arith.constant 0 : i32
    %c0_i32_1 = arith.constant 0 : i32
    return %c0_i32, %c0_i32_0 : i32, i32
  }
  func.func @transform_6(%arg0: i32) -> (i32, i32) {
    %c0_i32 = arith.constant 0 : i32
    %c0_i32_0 = arith.constant 0 : i32
    %c0_i32_1 = arith.constant 0 : i32
    return %c0_i32, %c0_i32_0 : i32, i32
  }
  func.func @transform_7(%arg0: i32) -> (i32, i32) {
    %c0_i32 = arith.constant 0 : i32
    %c0_i32_0 = arith.constant 0 : i32
    %c0_i32_1 = arith.constant 0 : i32
    return %c0_i32, %c0_i32_0 : i32, i32
  }
  func.func @transform_8(%arg0: i32) -> (i32, i32) {
    %c0_i32 = arith.constant 0 : i32
    %c0_i32_0 = arith.constant 0 : i32
    %c0_i32_1 = arith.constant 0 : i32
    return %c0_i32, %c0_i32_0 : i32, i32
  }
  func.func @transform_9(%arg0: i32) -> (i32, i32) {
    %c0_i32 = arith.constant 0 : i32
    %c0_i32_0 = arith.constant 0 : i32
    %c0_i32_1 = arith.constant 0 : i32
    return %c0_i32, %c0_i32_0 : i32, i32
  }
  func.func @transform_10(%arg0: i32) -> (i32, i32) {
    %c0_i32 = arith.constant 0 : i32
    %c0_i32_0 = arith.constant 0 : i32
    %c0_i32_1 = arith.constant 0 : i32
    return %c0_i32, %c0_i32_0 : i32, i32
  }
  func.func @transform_11(%arg0: i32) -> (i32, i32) {
    %c0_i32 = arith.constant 0 : i32
    %c0_i32_0 = arith.constant 0 : i32
    %c0_i32_1 = arith.constant 0 : i32
    return %c0_i32, %c0_i32_0 : i32, i32
  }
  func.func @transform_12(%arg0: i32) -> (i32, i32) {
    %c0_i32 = arith.constant 0 : i32
    %c0_i32_0 = arith.constant 0 : i32
    %c0_i32_1 = arith.constant 0 : i32
    return %c0_i32, %c0_i32_0 : i32, i32
  }
  func.func @transform_13(%arg0: i32) -> (i32, i32) {
    %c0_i32 = arith.constant 0 : i32
    %c0_i32_0 = arith.constant 0 : i32
    return %arg0, %c0_i32 : i32, i32
  }
}

</mosaic_0001>

<bundles_post_ra>
// kernel: tpu_custom_call.1
= control target key start
LH: loop header
LB: loop body
LE: loop exit
PB: predicated region body
PF: predicated region fallthrough
CT: control target
= control target key end

     0   :  { %18 = vsyncpa [#allocation3], 0  ;;  %s851_s0 = inlined_call_operand.vmem [shape: f32[8,32], index: 0, kind: input, shape index: {}]   ;;  %s852_s1 = inlined_call_operand.vmem [shape: bf16[32,32], index: 1, kind: input, shape index: {}]   ;;  %s853_s2 = inlined_call_operand.hbm [shape: f32[1,32], index: 2, kind: input, shape index: {}]   ;;  %s854_s3 = inlined_call_operand.hbm [shape: f32[1,32], index: 3, kind: input, shape index: {}]   ;;  %s855_s4 = inlined_call_operand.hbm [shape: f32[1,32], index: 4, kind: input, shape index: {}]   ;;  %s856_s5 = inlined_call_operand.hbm [shape: bf16[32,32], index: 5, kind: input, shape index: {}]   ;;  %s857_s6 = inlined_call_operand.hbm [shape: f32[1,32], index: 6, kind: input, shape index: {}]   ;;  %s858_s7 = inlined_call_operand.hbm [shape: f32[1,32], index: 7, kind: input, shape index: {}]   ;;  %s859_s8 = inlined_call_operand.hbm [shape: f32[1,32], index: 8, kind: input, shape index: {}]   ;;  %s860_s9 = inlined_call_operand.vmem [shape: bf16[32,16], index: 9, kind: input, shape index: {}]   ;;  %s861_s10 = inlined_call_operand.vmem [shape: f32[1,16], index: 10, kind: input, shape index: {}]   ;;  %s862_s11 = inlined_call_operand.hbm [shape: bf16[16,128], index: 11, kind: input, shape index: {}]   ;;  %s863_s12 = inlined_call_operand.vmem [shape: f32[1,128], index: 12, kind: input, shape index: {}]   ;;  %s864_s13 = inlined_call_operand.hbm [shape: f32[8,128], index: 13, kind: output, shape index: {}]  }
   0x1   :  { %19 = vsyncpa [#allocation6], 0 }
   0x2   :  { %20 = vsyncpa [#allocation9], 0 }
   0x3   :  { %21 = vsyncpa [#allocation12], 0 }
   0x4   :  { %22 = vsyncpa [#allocation15], 0  ;;  %s44_s27 = sshll.u32 %s854_s3, 4  ;;  %s45_s27 = int_to_ptr.hbm [resolvable:$true] %s44_s27 }
   0x5   :  { %23 = vsyncpa [#allocation4], 0  ;;  %s707_s28 = smov [#allocation5]   ;;  %s65_s15 = sshll.u32 %s856_s5, 4  ;;  %s66_s15 = int_to_ptr.hbm [resolvable:$true] %s65_s15 }
   0x6   :  { %s46_s29 = sshll.u32 %s707_s28, 4  ;;  %s708_s16 = smov [#allocation8]   ;;  %s47_s29 = int_to_ptr.vmem [resolvable:$true] %s46_s29 }
   0x7   :  { %49 = dma.hbm_to_vmem [thread:$0]  %s45_s27, 16, %s47_s29, [#allocation6]  }
   0x8   :  { %s67_s17 = sshll.u32 %s708_s16, 4  ;;  %s709_s18 = smov 64   ;;  %s68_s17 = int_to_ptr.vmem [resolvable:$true] %s67_s17 }
   0x9   :  { %s710_s19 = smov 4   ;;  %s90_s21 = sshll.u32 %s858_s7, 4  ;;  %s91_s21 = int_to_ptr.hbm [resolvable:$true] %s90_s21 }
   0xa   :  { %73 = dma.hbm_to_vmem [thread:$0]  %s66_s15, 256, %s68_s17, [#allocation9], %s709_s18, %s709_s18, %s710_s19  }
   0xb   :  { %s711_s22 = smov [#allocation11]   ;;  %s33_s25 = sshll.u32 %s853_s2, 4  ;;  %s34_s25 = int_to_ptr.hbm [resolvable:$true] %s33_s25 }
   0xc   :  { %s92_s23 = sshll.u32 %s711_s22, 4  ;;  %s712_s26 = smov [#allocation2]   ;;  %s93_s23 = int_to_ptr.vmem [resolvable:$true] %s92_s23 }
   0xd   :  { %95 = dma.hbm_to_vmem [thread:$0]  %s91_s21, 16, %s93_s23, [#allocation12]  }
   0xe   :  { %s35_s27 = sshll.u32 %s712_s26, 4  ;;  %s55_s30 = sshll.u32 %s855_s4, 4  ;;  %s36_s27 = int_to_ptr.vmem [resolvable:$true] %s35_s27  ;;  %s56_s30 = int_to_ptr.hbm [resolvable:$true] %s55_s30 }
   0xf   :  { %38 = dma.hbm_to_vmem [thread:$0]  %s34_s25, 16, %s36_s27, [#allocation3]  }
  0x10   :  { %s79_s15 = sshll.u32 %s857_s6, 4  ;;  %s713_s16 = smov [#allocation7]   ;;  %s80_s15 = int_to_ptr.hbm [resolvable:$true] %s79_s15 }
  0x11   :  { %s57_s17 = sshll.u32 %s713_s16, 4  ;;  %s714_s2 = smov [#allocation10]   ;;  %s58_s17 = int_to_ptr.vmem [resolvable:$true] %s57_s17 }
  0x12   :  { %60 = dma.hbm_to_vmem [thread:$0]  %s56_s30, 16, %s58_s17, [#allocation6]  }
  0x13   :  { %s81_s3 = sshll.u32 %s714_s2, 4  ;;  %s101_s22 = sshll.u32 %s859_s8, 4  ;;  %s82_s3 = int_to_ptr.vmem [resolvable:$true] %s81_s3  ;;  %s102_s22 = int_to_ptr.hbm [resolvable:$true] %s101_s22 }
  0x14   :  { %84 = dma.hbm_to_vmem [thread:$0]  %s80_s15, 16, %s82_s3, [#allocation9]  }
  0x15   :  { %s115_s5 = sshll.u32 %s862_s11, 4  ;;  %s715_s24 = smov [#allocation13]   ;;  %s116_s5 = int_to_ptr.hbm [resolvable:$true] %s115_s5 }
  0x16   :  { %s103_s6 = sshll.u32 %s715_s24, 4  ;;  %s716_s25 = smov [#allocation14]   ;;  %s104_s6 = int_to_ptr.vmem [resolvable:$true] %s103_s6 }
  0x17   :  { %106 = dma.hbm_to_vmem [thread:$0]  %s102_s22, 16, %s104_s6, [#allocation12]  }
  0x18   :  { %s117_s26 = sshll.u32 %s716_s25, 4  ;;  %s118_s26 = int_to_ptr.vmem [resolvable:$true] %s117_s26 }
  0x19   :  { %123 = dma.hbm_to_vmem [thread:$0]  %s116_s5, 128, %s118_s26, [#allocation15], %s709_s18, %s709_s18, %s710_s19  }
  0x1a   :  { %695 = dma.done.wait [#allocation3], 16  }
  0x1b   :  { %696 = vsyncadd [#allocation3], 4294967280 }
  0x1c   :  { %697 = dma.done.wait [#allocation6], 32  }
  0x1d   :  { %698 = vsyncadd [#allocation6], 4294967264 }
  0x1e   :  { %699 = dma.done.wait [#allocation9], 272  }
  0x1f   :  { %700 = vsyncadd [#allocation9], 4294967024 }
  0x20   :  { %701 = dma.done.wait [#allocation12], 32  }
  0x21   :  { %702 = vsyncadd [#allocation12], 4294967264 }
  0x22   :  { %703 = dma.done.wait [#allocation15], 128  }
  0x23   :  { %704 = vsyncadd [#allocation15], 4294967168  ;;  %v446_v0 = vld [vmem:[%s852_s1 + $0x8] sm:$0xff]  ;;  %v445_v1 = vld [vmem:[%s852_s1] sm:$0xff]  ;;  %vm181_vm0 = vcmask 261120   ;;  %vm358_vm7 = vcmask 130048  }
  0x24   :  { %v159_v2 = vld [vmem:[%s851_s0] sm:$0xff]  ;;  %191 = vmatpush.bf16.msra.mxu0 %v446_v0  ;;  %v448_v12 = vld [vmem:[#allocation8 + $0x8] sm:$0xff]  ;;  %v466_v36 = vld [vmem:[#allocation10] ss:$0 sm:$0xff]  ;;  %s399_s2 = sshll.u32 %s864_s13, 4  ;;  %s400_s2 = int_to_ptr.hbm [resolvable:$true] %s399_s2 }
  0x25   :  { %v160_v3 = vpack.c.bf16 %v159_v2, %v159_v2  ;;  %v463_v4 = vld [vmem:[#allocation2] ss:$0 sm:$0xff]  ;;  %264 = vmatpush.bf16.msra.mxu1 %v448_v12  ;;  %v447_v13 = vld [vmem:[#allocation8] sm:$0xff]  ;;  %v464_v28 = vld [vmem:[#allocation5] ss:$0 sm:$0xff] }
  0x26   :  { %v465_v31 = vld [vmem:[#allocation7] ss:$0 sm:$0xff]  ;;  %v450_v44 = vld [vmem:[%s860_s9 + $0x8] sm:$0xff]  ;;  %v467_v60 = vld [vmem:[#allocation11] ss:$0 sm:$0xff] }
  0x27   :  { %337 = vmatpush.bf16.msra.mxu2 %v450_v44  ;;  %v449_v45 = vld [vmem:[%s860_s9] sm:$0xff]  ;;  %v468_v63 = vld [vmem:[#allocation13] ss:$0 sm:$0xff] }
  0x28   :  { %192 = vmatpush.bf16.msra.mxu0 %v445_v1 }
  0x29   :  { %265 = vmatpush.bf16.msra.mxu1 %v447_v13  ;;  %v470_v13 = vld [vmem:[%s863_s12] ss:$0 sm:$0xff] }
  0x2b   :  { %421 = vmatmul.msk.bf16.vlgmr.msra.gmra.mxu0 %vm181_vm0, %v160_v3  ;;  %338 = vmatpush.bf16.msra.mxu2 %v449_v45 }
  0xa8   :  { %v194_v5 = vpop.f32.mrf.mxu0 }
  0xa9   :  { %v195_v6 = vadd.f32 %v463_v4, %v194_v5  ;;  %v451_v4 = vld [vmem:[#allocation14] sm:$0xff] }
  0xaa   :  { %369 = vmatpush.bf16.msra.mxu3 %v451_v4  ;;  %v469_v5 = vld [vmem:[%s861_s10] ss:$0 sm:$0xff]  ;;  %s717_s10 = smov [#allocation16]  }
  0xab   :  { %v200_v7 = vsel %vm181_vm0, %v195_v6, 0.0  ;;  %v203_v8 = vmul.f32 %v195_v6, %v195_v6  ;;  %s397_s16 = sshll.u32 %s717_s10, 4  ;;  %s398_s16 = int_to_ptr.vmem [resolvable:$true] %s397_s16 }
  0xac   :  { %201 = vadd.xlane.f32.xlu0 %v200_v7 }
  0xad   :  { %v204_v10 = vsel %vm181_vm0, %v203_v8, 0.0 }
  0xb0   :  { %v196_v9 = vpop.f32.mrf.mxu0 }
  0xb4   :  { %205 = vadd.xlane.f32.xlu0 %v204_v10 }
 0x11f   :  { %v202_v11 = vpop.xlane.xlu0 %201 }
 0x120   :  { %v207_v14 = vmul.f32 0.03125, %v202_v11  ;;  %v375_v11 = vlaneseq }
 0x122   :  { %v209_v16 = vmul.f32 %v207_v14, %v207_v14  ;;  %v212_v27 = vsub.f32 %v195_v6, %v207_v14  ;;  %v376_v12 = vand.u32 127, %v375_v11 }
 0x124   :  { %vm388_vm8 = vcmp.eq.s32.totalorder %v376_v12, 8  ;;  %vm377_vm9 = vcmp.lt.s32.totalorder %v376_v12, 8 }
 0x127   :  { %v206_v15 = vpop.xlane.xlu0 %205 }
 0x128   :  { %v208_v17 = vmul.f32 0.03125, %v206_v15 }
 0x12a   :  { %v210_v18 = vsub.f32 %v208_v17, %v209_v16 }
 0x12c   :  { %v211_v19 = vmax.f32 %v210_v18, 0.0 }
 0x12e   :  { %v213_v20 = vadd.f32 1e-05, %v211_v19 }
 0x130   :  { %471 = vrsqrt.f32 %v213_v20  ;;  %vm220_vm2 = vweird.f32 %v213_v20 }
 0x136   :  { %v472_v21 = vpop.eup %471 }
 0x137   :  { %v215_v22 = vmul.f32 %v472_v21, %v213_v20  ;;  %vm221_vm1 = vweird.f32 %v472_v21 }
 0x138   :  { %vm222_vm3 = vmor %vm220_vm2, %vm221_vm1 }
 0x139   :  { %v216_v23 = vmul.f32 %v472_v21, %v215_v22 }
 0x13b   :  { %v217_v24 = vmul.f32 0.5, %v216_v23 }
 0x13d   :  { %v218_v25 = vsub.f32 1.5, %v217_v24 }
 0x13f   :  { %v219_v26 = vmul.f32 %v472_v21, %v218_v25 }
 0x141   :  { %v223_v29 = vsel %vm222_vm3, %v472_v21, %v219_v26 }
 0x142   :  { %v224_v30 = vmul.f32 %v223_v29, %v212_v27 }
 0x144   :  { %v228_v32 = vmul.f32 %v464_v28, %v224_v30 }
 0x146   :  { %v232_v33 = vadd.f32 %v465_v31, %v228_v32 }
 0x148   :  { %v233_v34 = vmax.f32 %v232_v33, 0.0 }
 0x14a   :  { %v234_v35 = vpack.c.bf16 %v233_v34, %v233_v34 }
 0x14c   :  { %430 = vmatmul.msk.bf16.vlgmr.msra.gmra.mxu1 %vm181_vm0, %v234_v35 }
 0x1c9   :  { %v267_v37 = vpop.f32.mrf.mxu1 }
 0x1ca   :  { %v268_v38 = vadd.f32 %v466_v36, %v267_v37 }
 0x1cc   :  { %v273_v39 = vsel %vm181_vm0, %v268_v38, 0.0  ;;  %v276_v40 = vmul.f32 %v268_v38, %v268_v38 }
 0x1cd   :  { %274 = vadd.xlane.f32.xlu1 %v273_v39 }
 0x1ce   :  { %v277_v42 = vsel %vm181_vm0, %v276_v40, 0.0 }
 0x1d1   :  { %v269_v41 = vpop.f32.mrf.mxu1 }
 0x1d5   :  { %278 = vadd.xlane.f32.xlu1 %v277_v42 }
 0x240   :  { %v275_v43 = vpop.xlane.xlu1 %274 }
 0x241   :  { %v280_v46 = vmul.f32 0.03125, %v275_v43 }
 0x243   :  { %v282_v48 = vmul.f32 %v280_v46, %v280_v46  ;;  %v285_v59 = vsub.f32 %v268_v38, %v280_v46 }
 0x248   :  { %v279_v47 = vpop.xlane.xlu1 %278 }
 0x249   :  { %v281_v49 = vmul.f32 0.03125, %v279_v47 }
 0x24b   :  { %v283_v50 = vsub.f32 %v281_v49, %v282_v48 }
 0x24d   :  { %v284_v51 = vmax.f32 %v283_v50, 0.0 }
 0x24f   :  { %v286_v52 = vadd.f32 1e-05, %v284_v51 }
 0x251   :  { %473 = vrsqrt.f32 %v286_v52  ;;  %vm293_vm5 = vweird.f32 %v286_v52 }
 0x257   :  { %v474_v53 = vpop.eup %473 }
 0x258   :  { %v288_v54 = vmul.f32 %v474_v53, %v286_v52  ;;  %vm294_vm4 = vweird.f32 %v474_v53 }
 0x259   :  { %vm295_vm6 = vmor %vm293_vm5, %vm294_vm4 }
 0x25a   :  { %v289_v55 = vmul.f32 %v474_v53, %v288_v54 }
 0x25c   :  { %v290_v56 = vmul.f32 0.5, %v289_v55 }
 0x25e   :  { %v291_v57 = vsub.f32 1.5, %v290_v56 }
 0x260   :  { %v292_v58 = vmul.f32 %v474_v53, %v291_v57 }
 0x262   :  { %v296_v61 = vsel %vm295_vm6, %v474_v53, %v292_v58 }
 0x263   :  { %v297_v62 = vmul.f32 %v296_v61, %v285_v59 }
 0x265   :  { %v301_v0 = vmul.f32 %v467_v60, %v297_v62 }
 0x267   :  { %v305_v1 = vadd.f32 %v468_v63, %v301_v0 }
 0x269   :  { %v306_v2 = vmax.f32 %v305_v1, 0.0 }
 0x26b   :  { %v307_v3 = vpack.c.bf16 %v306_v2, %v306_v2 }
 0x26d   :  { %439 = vmatmul.msk.bf16.vlgmr.msra.gmra.mxu2 %vm181_vm0, %v307_v3 }
 0x2f0   :  { %v340_v6 = vpop.f32.mrf.mxu2 }
 0x2f1   :  { %v341_v7 = vadd.f32 %v469_v5, %v340_v6 }
 0x2f3   :  { %v344_v8 = vmax.f32 %v341_v7, 0.0 }
 0x2f5   :  { %v345_v9 = vpack.c.bf16 %v344_v8, %v344_v8 }
 0x2f7   :  { %444 = vmatmul.msk.bf16.vlgmr.msra.gmra.mxu3 %vm358_vm7, %v345_v9 }
 0x2f8   :  { %v342_v10 = vpop.f32.mrf.mxu2 }
 0x37a   :  { %v371_v14 = vpop.f32.mrf.mxu3 }
 0x37b   :  { %v372_v15 = vadd.f32 %v470_v13, %v371_v14 }
 0x37d   :  { %v389_v16 = vsel %vm388_vm8, %v372_v15, 0.0  ;;  %v378_v17 = vsel %vm377_vm9, %v372_v15, -1e+30 }
 0x37e   :  { %379 = vmax.xlane.f32.xlu2 %v378_v17 }
 0x382   :  { %v373_v18 = vpop.f32.mrf.mxu3 }
 0x3f1   :  { %v380_v19 = vpop.xlane.xlu2 %379 }
 0x3f2   :  { %v381_v20 = vsub.f32 %v378_v17, %v380_v19 }
 0x3f4   :  { %v382_v21 = vmul.f32 1.442695, %v381_v20 }
 0x3f6   :  { %475 = vpow2.f32 %v382_v21 }
 0x3fc   :  { %v476_v22 = vpop.eup %475 }
 0x3fd   :  { %384 = vadd.xlane.f32.xlu2 %v476_v22 }
 0x470   :  { %v385_v23 = vpop.xlane.xlu2 %384 }
 0x471   :  { %477 = vrcp.f32 %v385_v23 }
 0x477   :  { %v478_v24 = vpop.eup %477 }
 0x478   :  { %v387_v25 = vmul.f32 %v478_v24, %v476_v22 }
 0x47a   :  { %v390_v26 = vsel %vm377_vm9, %v387_v25, %v389_v16 }
 0x47b   :  { %391 = vst [vmem:[#allocation16] sm:$0xff] %v390_v26 }
 0x47c   :  { %402 = dma.vmem_to_hbm [thread:$0]  %s398_s16, 128, %s400_s2, [#allocation4]  }
 0x47d   :  { %705 = dma.done.wait [#allocation4], 128  }
 0x47e   :  { %706 = vsyncadd [#allocation4], 4294967168 }
 0x47f   :  { %407 = vsyncpa [#allocation3], 1 }
 0x480   :  { %408 = vsyncpa [#allocation6], 1 }
 0x481   :  { %409 = vsyncpa [#allocation9], 1 }
 0x482   :  { %410 = vsyncpa [#allocation12], 1 }
 0x483   :  { %411 = vsyncpa [#allocation15], 1 }
 0x484   :  { %412 = vsyncpa [#allocation4], 1 }

</bundles_post_ra>
